<compile_context>
chip_gen: v7x
topology: tpu7x:2x2x1
jax: 0.10.0
libtpu: 0.0.40
codegen_flags: <defaults>
</compile_context>

<pallas_src>
import functools

import jax
import jax.numpy as jnp
from jax.experimental import pallas as pl
from jax.experimental.pallas import tpu as pltpu

LANE = 128


def _round_up(v, m):
    return ((v + m - 1) // m) * m


def _pad_to(arr, shape):
    pads = [(0, t - s) for s, t in zip(arr.shape, shape)]
    return jnp.pad(arr, pads)


def _vmem_limit_bytes():
    # Generation-aware VMEM limit: physical capacity minus 16 MiB headroom
    # (~112 MiB on v5e/v6e with 128 MiB, ~48 MiB on v7x with 64 MiB).
    cap = 128 * 1024 * 1024
    try:
        info = pltpu.get_tpu_info()
        cap = int(getattr(info, "vmem_capacity_bytes", cap))
    except Exception:
        pass
    return max(32 * 1024 * 1024, cap - 16 * 1024 * 1024)


def graphcnn_kernel(x_ref, a_ref,
                    w1l_ref, w1r_ref, b1_ref,
                    w2l_ref, w2r_ref, b2_ref,
                    wl1_ref, bl1_ref,
                    wl2_ref, bl2_ref,
                    out_ref,
                    *, num_graphs, nodes_per_graph):
    mxu = a_ref.dtype                       # bf16 fast path / f32 validation
    a = a_ref[...]                          # [N, N], resident for all 4 layers

    def sage(h, wl_ref, wr_ref, b_ref):
        # h is f32; cast once at the MXU boundary (used by two dots).
        h_m = h.astype(mxu)
        # Mean aggregation on the MXU (f32 accumulation).
        agg = jnp.dot(a, h_m, preferred_element_type=jnp.float32)
        # Two accumulating K=128 dots (no concat intermediate, no padded-K).
        pre = jnp.dot(agg.astype(mxu), wl_ref[...],
                      preferred_element_type=jnp.float32)
        pre = pre + jnp.dot(h_m, wr_ref[...],
                            preferred_element_type=jnp.float32)
        # Implicit [1, hid] -> [N, hid] bias broadcast in vregs; tanh on EUP/VPU in f32.
        return jnp.tanh(pre + b_ref[...])

    # initial_conv + tanh (x is a pre-padded lane-dense f32 slab)
    h = sage(x_ref[...], w1l_ref, w1r_ref, b1_ref)

    # convolutional_layer applied 3x (shared weights) + tanh each time
    for _ in range(3):
        h = sage(h, w2l_ref, w2r_ref, b2_ref)

    # global max pool: free reshape + one sublane reduce over each graph block
    hid = h.shape[1]
    pooled = jnp.max(h.reshape(num_graphs, nodes_per_graph, hid), axis=1)

    # lin1 (shared) applied 3x + tanh (weights pre-transposed to [in, out])
    wl1 = wl1_ref[...]
    bl1 = bl1_ref[...]
    p = pooled
    for _ in range(3):
        p = jnp.tanh(jnp.dot(p.astype(mxu), wl1,
                             preferred_element_type=jnp.float32) + bl1)

    # lin2 (no activation); padded output lanes sliced off in the wrapper
    out_ref[...] = (jnp.dot(p.astype(mxu), wl2_ref[...],
                            preferred_element_type=jnp.float32) + bl2_ref[...])


def graphcnn_forward(x, a_mean, num_graphs, nodes_per_graph, params,
                     *, bf16_compute=True):
    """Fused GraphCNN forward.  params are PyTorch-convention weights W:[out,in]."""
    (w1l, w1r, b1, w2l, w2r, b2, wl1, bl1, wl2, bl2) = params
    n_nodes, f_in = x.shape
    # Pooling assumes contiguous, equal-sized per-graph node blocks.
    assert num_graphs * nodes_per_graph == n_nodes, (
        "graphcnn_forward requires contiguous equal-sized graph blocks")
    hid = w1l.shape[0]
    n_out = wl2.shape[0]

    f_in_p = _round_up(max(f_in, 1), LANE)
    hid_p = _round_up(hid, LANE)
    n_out_p = _round_up(n_out, LANE)

    mxu_dtype = jnp.bfloat16 if bf16_compute else jnp.float32

    def lin_to_mxu(w, in_p, out_p):
        # PyTorch Linear W:[out, in] -> pre-transposed, zero-padded [in_p, out_p],
        # cast to the MXU operand dtype host-side.
        return _pad_to(w.T.astype(jnp.float32), (in_p, out_p)).astype(mxu_dtype)

    w1l_t = lin_to_mxu(w1l, f_in_p, hid_p)
    w1r_t = lin_to_mxu(w1r, f_in_p, hid_p)
    w2l_t = lin_to_mxu(w2l, hid_p, hid_p)
    w2r_t = lin_to_mxu(w2r, hid_p, hid_p)
    wl1_t = lin_to_mxu(wl1, hid_p, hid_p)
    wl2_t = lin_to_mxu(wl2, hid_p, n_out_p)

    # Biases stay f32 (added on the VPU after f32 accumulation).
    b1_p = _pad_to(b1.astype(jnp.float32), (1, hid_p))
    b2_p = _pad_to(b2.astype(jnp.float32), (1, hid_p))
    bl1_p = _pad_to(bl1.astype(jnp.float32), (1, hid_p))
    bl2_p = _pad_to(bl2.astype(jnp.float32), (1, n_out_p))

    # Lane-dense node-feature slab (f32; cast at the MXU boundary in-kernel).
    x_p = _pad_to(x.astype(jnp.float32), (n_nodes, f_in_p))

    # Dominant [N, N] aggregation operand in the MXU dtype.
    a_in = a_mean.astype(mxu_dtype)

    kernel = functools.partial(graphcnn_kernel,
                               num_graphs=num_graphs,
                               nodes_per_graph=nodes_per_graph)
    vmem = pl.BlockSpec(memory_space=pltpu.MemorySpace.VMEM)
    out_p = pl.pallas_call(
        kernel,
        out_shape=jax.ShapeDtypeStruct((num_graphs, n_out_p), jnp.float32),
        in_specs=[vmem] * 12,
        out_specs=vmem,
        compiler_params=pltpu.CompilerParams(
            vmem_limit_bytes=_vmem_limit_bytes()),
    )(x_p, a_in,
      w1l_t, w1r_t, b1_p,
      w2l_t, w2r_t, b2_p,
      wl1_t, bl1_p, wl2_t, bl2_p)
    return out_p[:, :n_out]


def reference_forward(x, a_mean, mask, params):
    """Pure-JAX reference matching the original PyTorch module."""
    (w1l, w1r, b1, w2l, w2r, b2, wl1, bl1, wl2, bl2) = params

    def sage(h, wl, wr, b):
        return jnp.tanh((a_mean @ h) @ wl.T + h @ wr.T + b)

    h = sage(x, w1l, w1r, b1)
    for _ in range(3):
        h = sage(h, w2l, w2r, b2)
    masked = jnp.where(mask[:, :, None] > 0.5, h[None, :, :], -1e30)
    p = jnp.max(masked, axis=1)
    for _ in range(3):
        p = jnp.tanh(p @ wl1.T + bl1)
    return p @ wl2.T + bl2


if __name__ == "__main__":
    # Small synthetic graph batch: 2 graphs of 8 nodes each (ring graphs).
    N, F_IN, HID, G, N_OUT = 16, 4, 32, 2, 3
    nodes_per_graph = N // G

    # edge_index (bidirectional ring within each graph)
    src, dst = [], []
    for g in range(G):
        base = g * nodes_per_graph
        for i in range(nodes_per_graph):
            a_node = base + i
            b_node = base + (i + 1) % nodes_per_graph
            src += [a_node, b_node]
            dst += [b_node, a_node]
    src = jnp.array(src, dtype=jnp.int32)
    dst = jnp.array(dst, dtype=jnp.int32)

    # Dense mean-aggregation matrix: A_mean[i, j] = 1/deg_in(i) for edge j->i
    adj = jnp.zeros((N, N), dtype=jnp.float32).at[dst, src].add(1.0)
    deg = jnp.clip(adj.sum(axis=1, keepdims=True), 1.0, None)
    a_mean = adj / deg

    # batch membership mask [G, N] (only used by the pure-JAX reference)
    batch = jnp.repeat(jnp.arange(G, dtype=jnp.int32), nodes_per_graph)
    mask = (jax.nn.one_hot(batch, G, dtype=jnp.float32)).T  # [G, N]

    # Deterministic parameter init (synthetic, not a checkpoint load)
    key = jax.random.PRNGKey(0)
    ks = jax.random.split(key, 11)
    scale = 0.1
    x = jax.random.normal(ks[0], (N, F_IN), dtype=jnp.float32)
    w1l = scale * jax.random.normal(ks[1], (HID, F_IN), dtype=jnp.float32)
    w1r = scale * jax.random.normal(ks[2], (HID, F_IN), dtype=jnp.float32)
    b1 = scale * jax.random.normal(ks[3], (1, HID), dtype=jnp.float32)
    w2l = scale * jax.random.normal(ks[4], (HID, HID), dtype=jnp.float32)
    w2r = scale * jax.random.normal(ks[5], (HID, HID), dtype=jnp.float32)
    b2 = scale * jax.random.normal(ks[6], (1, HID), dtype=jnp.float32)
    wl1 = scale * jax.random.normal(ks[7], (HID, HID), dtype=jnp.float32)
    bl1 = scale * jax.random.normal(ks[8], (1, HID), dtype=jnp.float32)
    wl2 = scale * jax.random.normal(ks[9], (N_OUT, HID), dtype=jnp.float32)
    bl2 = scale * jax.random.normal(ks[10], (1, N_OUT), dtype=jnp.float32)
    params = (w1l, w1r, b1, w2l, w2r, b2, wl1, bl1, wl2, bl2)

    ref = reference_forward(x, a_mean, mask, params)

    # f32 validation path: tight tolerance against the reference
    out_f32 = graphcnn_forward(x, a_mean, G, nodes_per_graph, params,
                               bf16_compute=False)
    out_f32 = jax.block_until_ready(out_f32)
    assert out_f32.shape == (G, N_OUT)
    assert jnp.allclose(out_f32, ref, rtol=1e-4, atol=1e-5)

    # Fast path (bf16 MXU operands everywhere, f32 accumulation): looser tol
    out = graphcnn_forward(x, a_mean, G, nodes_per_graph, params,
                           bf16_compute=True)
    out = jax.block_until_ready(out)
    assert out.shape == (G, N_OUT)
    assert jnp.allclose(out, ref, rtol=5e-2, atol=1e-2)

    print("KERNEL_OK")
</pallas_src>

<mosaic_0001>
module attributes {stable_mosaic.version = 11 : i64} {
  func.func @graphcnn_kernel(%arg0: memref<16x128xf32, #tpu.memory_space<vmem>>, %arg1: memref<16x16xf32, #tpu.memory_space<vmem>>, %arg2: memref<128x128xf32, #tpu.memory_space<vmem>>, %arg3: memref<128x128xf32, #tpu.memory_space<vmem>>, %arg4: memref<1x128xf32, #tpu.memory_space<vmem>>, %arg5: memref<128x128xf32, #tpu.memory_space<vmem>>, %arg6: memref<128x128xf32, #tpu.memory_space<vmem>>, %arg7: memref<1x128xf32, #tpu.memory_space<vmem>>, %arg8: memref<128x128xf32, #tpu.memory_space<vmem>>, %arg9: memref<1x128xf32, #tpu.memory_space<vmem>>, %arg10: memref<128x128xf32, #tpu.memory_space<vmem>>, %arg11: memref<1x128xf32, #tpu.memory_space<vmem>>, %arg12: memref<2x128xf32, #tpu.memory_space<vmem>>) attributes {dimension_semantics = [], scalar_prefetch = 0 : i64, scratch_operands = 0 : i64, tpu.core_type = #tpu.core_type<tc>} {
    %c0 = arith.constant 0 : index
    %c0_0 = arith.constant 0 : index
    %0 = vector.load %arg1[%c0, %c0_0] : memref<16x16xf32, #tpu.memory_space<vmem>>, vector<16x16xf32>
    %c0_1 = arith.constant 0 : index
    %c0_2 = arith.constant 0 : index
    %1 = vector.load %arg0[%c0_1, %c0_2] : memref<16x128xf32, #tpu.memory_space<vmem>>, vector<16x128xf32>
    %cst = arith.constant dense<0.000000e+00> : vector<16x128xf32>
    %2 = tpu.matmul %0, %1, %cst {dimension_numbers = #tpu.dot_dimension_numbers<[1], [0], [0], [1], [0, 0, 1, 1], [], []>} : vector<16x16xf32>, vector<16x128xf32>, vector<16x128xf32> -> vector<16x128xf32>
    %c0_3 = arith.constant 0 : index
    %c0_4 = arith.constant 0 : index
    %3 = vector.load %arg2[%c0_3, %c0_4] : memref<128x128xf32, #tpu.memory_space<vmem>>, vector<128x128xf32>
    %cst_5 = arith.constant dense<0.000000e+00> : vector<16x128xf32>
    %4 = tpu.matmul %2, %3, %cst_5 {dimension_numbers = #tpu.dot_dimension_numbers<[1], [0], [0], [1], [0, 0, 1, 1], [], []>} : vector<16x128xf32>, vector<128x128xf32>, vector<16x128xf32> -> vector<16x128xf32>
    %c0_6 = arith.constant 0 : index
    %c0_7 = arith.constant 0 : index
    %5 = vector.load %arg3[%c0_6, %c0_7] : memref<128x128xf32, #tpu.memory_space<vmem>>, vector<128x128xf32>
    %cst_8 = arith.constant dense<0.000000e+00> : vector<16x128xf32>
    %6 = tpu.matmul %1, %5, %cst_8 {dimension_numbers = #tpu.dot_dimension_numbers<[1], [0], [0], [1], [0, 0, 1, 1], [], []>} : vector<16x128xf32>, vector<128x128xf32>, vector<16x128xf32> -> vector<16x128xf32>
    %7 = arith.addf %4, %6 : vector<16x128xf32>
    %c0_9 = arith.constant 0 : index
    %c0_10 = arith.constant 0 : index
    %8 = vector.load %arg4[%c0_9, %c0_10] : memref<1x128xf32, #tpu.memory_space<vmem>>, vector<1x128xf32>
    %9 = vector.broadcast %8 : vector<1x128xf32> to vector<16x128xf32>
    %10 = arith.addf %7, %9 : vector<16x128xf32>
    %11 = math.tanh %10 : vector<16x128xf32>
    %cst_11 = arith.constant dense<0.000000e+00> : vector<16x128xf32>
    %12 = tpu.matmul %0, %11, %cst_11 {dimension_numbers = #tpu.dot_dimension_numbers<[1], [0], [0], [1], [0, 0, 1, 1], [], []>} : vector<16x16xf32>, vector<16x128xf32>, vector<16x128xf32> -> vector<16x128xf32>
    %c0_12 = arith.constant 0 : index
    %c0_13 = arith.constant 0 : index
    %13 = vector.load %arg5[%c0_12, %c0_13] : memref<128x128xf32, #tpu.memory_space<vmem>>, vector<128x128xf32>
    %cst_14 = arith.constant dense<0.000000e+00> : vector<16x128xf32>
    %14 = tpu.matmul %12, %13, %cst_14 {dimension_numbers = #tpu.dot_dimension_numbers<[1], [0], [0], [1], [0, 0, 1, 1], [], []>} : vector<16x128xf32>, vector<128x128xf32>, vector<16x128xf32> -> vector<16x128xf32>
    %c0_15 = arith.constant 0 : index
    %c0_16 = arith.constant 0 : index
    %15 = vector.load %arg6[%c0_15, %c0_16] : memref<128x128xf32, #tpu.memory_space<vmem>>, vector<128x128xf32>
    %cst_17 = arith.constant dense<0.000000e+00> : vector<16x128xf32>
    %16 = tpu.matmul %11, %15, %cst_17 {dimension_numbers = #tpu.dot_dimension_numbers<[1], [0], [0], [1], [0, 0, 1, 1], [], []>} : vector<16x128xf32>, vector<128x128xf32>, vector<16x128xf32> -> vector<16x128xf32>
    %17 = arith.addf %14, %16 : vector<16x128xf32>
    %c0_18 = arith.constant 0 : index
    %c0_19 = arith.constant 0 : index
    %18 = vector.load %arg7[%c0_18, %c0_19] : memref<1x128xf32, #tpu.memory_space<vmem>>, vector<1x128xf32>
    %19 = vector.broadcast %18 : vector<1x128xf32> to vector<16x128xf32>
    %20 = arith.addf %17, %19 : vector<16x128xf32>
    %21 = math.tanh %20 : vector<16x128xf32>
    %cst_20 = arith.constant dense<0.000000e+00> : vector<16x128xf32>
    %22 = tpu.matmul %0, %21, %cst_20 {dimension_numbers = #tpu.dot_dimension_numbers<[1], [0], [0], [1], [0, 0, 1, 1], [], []>} : vector<16x16xf32>, vector<16x128xf32>, vector<16x128xf32> -> vector<16x128xf32>
    %c0_21 = arith.constant 0 : index
    %c0_22 = arith.constant 0 : index
    %23 = vector.load %arg5[%c0_21, %c0_22] : memref<128x128xf32, #tpu.memory_space<vmem>>, vector<128x128xf32>
    %cst_23 = arith.constant dense<0.000000e+00> : vector<16x128xf32>
    %24 = tpu.matmul %22, %23, %cst_23 {dimension_numbers = #tpu.dot_dimension_numbers<[1], [0], [0], [1], [0, 0, 1, 1], [], []>} : vector<16x128xf32>, vector<128x128xf32>, vector<16x128xf32> -> vector<16x128xf32>
    %c0_24 = arith.constant 0 : index
    %c0_25 = arith.constant 0 : index
    %25 = vector.load %arg6[%c0_24, %c0_25] : memref<128x128xf32, #tpu.memory_space<vmem>>, vector<128x128xf32>
    %cst_26 = arith.constant dense<0.000000e+00> : vector<16x128xf32>
    %26 = tpu.matmul %21, %25, %cst_26 {dimension_numbers = #tpu.dot_dimension_numbers<[1], [0], [0], [1], [0, 0, 1, 1], [], []>} : vector<16x128xf32>, vector<128x128xf32>, vector<16x128xf32> -> vector<16x128xf32>
    %27 = arith.addf %24, %26 : vector<16x128xf32>
    %c0_27 = arith.constant 0 : index
    %c0_28 = arith.constant 0 : index
    %28 = vector.load %arg7[%c0_27, %c0_28] : memref<1x128xf32, #tpu.memory_space<vmem>>, vector<1x128xf32>
    %29 = vector.broadcast %28 : vector<1x128xf32> to vector<16x128xf32>
    %30 = arith.addf %27, %29 : vector<16x128xf32>
    %31 = math.tanh %30 : vector<16x128xf32>
    %cst_29 = arith.constant dense<0.000000e+00> : vector<16x128xf32>
    %32 = tpu.matmul %0, %31, %cst_29 {dimension_numbers = #tpu.dot_dimension_numbers<[1], [0], [0], [1], [0, 0, 1, 1], [], []>} : vector<16x16xf32>, vector<16x128xf32>, vector<16x128xf32> -> vector<16x128xf32>
    %c0_30 = arith.constant 0 : index
    %c0_31 = arith.constant 0 : index
    %33 = vector.load %arg5[%c0_30, %c0_31] : memref<128x128xf32, #tpu.memory_space<vmem>>, vector<128x128xf32>
    %cst_32 = arith.constant dense<0.000000e+00> : vector<16x128xf32>
    %34 = tpu.matmul %32, %33, %cst_32 {dimension_numbers = #tpu.dot_dimension_numbers<[1], [0], [0], [1], [0, 0, 1, 1], [], []>} : vector<16x128xf32>, vector<128x128xf32>, vector<16x128xf32> -> vector<16x128xf32>
    %c0_33 = arith.constant 0 : index
    %c0_34 = arith.constant 0 : index
    %35 = vector.load %arg6[%c0_33, %c0_34] : memref<128x128xf32, #tpu.memory_space<vmem>>, vector<128x128xf32>
    %cst_35 = arith.constant dense<0.000000e+00> : vector<16x128xf32>
    %36 = tpu.matmul %31, %35, %cst_35 {dimension_numbers = #tpu.dot_dimension_numbers<[1], [0], [0], [1], [0, 0, 1, 1], [], []>} : vector<16x128xf32>, vector<128x128xf32>, vector<16x128xf32> -> vector<16x128xf32>
    %37 = arith.addf %34, %36 : vector<16x128xf32>
    %c0_36 = arith.constant 0 : index
    %c0_37 = arith.constant 0 : index
    %38 = vector.load %arg7[%c0_36, %c0_37] : memref<1x128xf32, #tpu.memory_space<vmem>>, vector<1x128xf32>
    %39 = vector.broadcast %38 : vector<1x128xf32> to vector<16x128xf32>
    %40 = arith.addf %37, %39 : vector<16x128xf32>
    %41 = math.tanh %40 : vector<16x128xf32>
    %42 = vector.shape_cast %41 : vector<16x128xf32> to vector<2x8x128xf32>
    %cst_38 = arith.constant dense<0xFF800000> : vector<2x128xf32>
    %43 = vector.multi_reduction <maximumf>, %42, %cst_38 [1] : vector<2x8x128xf32> to vector<2x128xf32>
    %c0_39 = arith.constant 0 : index
    %c0_40 = arith.constant 0 : index
    %44 = vector.load %arg8[%c0_39, %c0_40] : memref<128x128xf32, #tpu.memory_space<vmem>>, vector<128x128xf32>
    %c0_41 = arith.constant 0 : index
    %c0_42 = arith.constant 0 : index
    %45 = vector.load %arg9[%c0_41, %c0_42] : memref<1x128xf32, #tpu.memory_space<vmem>>, vector<1x128xf32>
    %cst_43 = arith.constant dense<0.000000e+00> : vector<2x128xf32>
    %46 = tpu.matmul %43, %44, %cst_43 {dimension_numbers = #tpu.dot_dimension_numbers<[1], [0], [0], [1], [0, 0, 1, 1], [], []>} : vector<2x128xf32>, vector<128x128xf32>, vector<2x128xf32> -> vector<2x128xf32>
    %47 = vector.broadcast %45 : vector<1x128xf32> to vector<2x128xf32>
    %48 = arith.addf %46, %47 : vector<2x128xf32>
    %49 = math.tanh %48 : vector<2x128xf32>
    %cst_44 = arith.constant dense<0.000000e+00> : vector<2x128xf32>
    %50 = tpu.matmul %49, %44, %cst_44 {dimension_numbers = #tpu.dot_dimension_numbers<[1], [0], [0], [1], [0, 0, 1, 1], [], []>} : vector<2x128xf32>, vector<128x128xf32>, vector<2x128xf32> -> vector<2x128xf32>
    %51 = vector.broadcast %45 : vector<1x128xf32> to vector<2x128xf32>
    %52 = arith.addf %50, %51 : vector<2x128xf32>
    %53 = math.tanh %52 : vector<2x128xf32>
    %cst_45 = arith.constant dense<0.000000e+00> : vector<2x128xf32>
    %54 = tpu.matmul %53, %44, %cst_45 {dimension_numbers = #tpu.dot_dimension_numbers<[1], [0], [0], [1], [0, 0, 1, 1], [], []>} : vector<2x128xf32>, vector<128x128xf32>, vector<2x128xf32> -> vector<2x128xf32>
    %55 = vector.broadcast %45 : vector<1x128xf32> to vector<2x128xf32>
    %56 = arith.addf %54, %55 : vector<2x128xf32>
    %57 = math.tanh %56 : vector<2x128xf32>
    %c0_46 = arith.constant 0 : index
    %c0_47 = arith.constant 0 : index
    %58 = vector.load %arg10[%c0_46, %c0_47] : memref<128x128xf32, #tpu.memory_space<vmem>>, vector<128x128xf32>
    %cst_48 = arith.constant dense<0.000000e+00> : vector<2x128xf32>
    %59 = tpu.matmul %57, %58, %cst_48 {dimension_numbers = #tpu.dot_dimension_numbers<[1], [0], [0], [1], [0, 0, 1, 1], [], []>} : vector<2x128xf32>, vector<128x128xf32>, vector<2x128xf32> -> vector<2x128xf32>
    %c0_49 = arith.constant 0 : index
    %c0_50 = arith.constant 0 : index
    %60 = vector.load %arg11[%c0_49, %c0_50] : memref<1x128xf32, #tpu.memory_space<vmem>>, vector<1x128xf32>
    %61 = vector.broadcast %60 : vector<1x128xf32> to vector<2x128xf32>
    %62 = arith.addf %59, %61 : vector<2x128xf32>
    %c0_51 = arith.constant 0 : index
    %c0_52 = arith.constant 0 : index
    %63 = vector.load %arg12[%c0_51, %c0_52] : memref<2x128xf32, #tpu.memory_space<vmem>>, vector<2x128xf32>
    tpu.vector_store %arg12[%c0_51, %c0_52], %62 {strides = array<i32>} : memref<2x128xf32, #tpu.memory_space<vmem>>, vector<2x128xf32>,
    return
  }
}

</mosaic_0001>

<bundles_post_ra>
// kernel: tpu_custom_call.1
= control target key start
LH: loop header
LB: loop body
LE: loop exit
PB: predicated region body
PF: predicated region fallthrough
CT: control target
= control target key end

     0   :  { %17 = vsyncpa [#allocation3], 0  ;;  %s3476_s0 = inlined_call_operand.hbm [shape: f32[16,128], index: 0, kind: input, shape index: {}]   ;;  %s3477_s1 = inlined_call_operand.hbm [shape: f32[16,16], index: 1, kind: input, shape index: {}]   ;;  %s3478_s2 = inlined_call_operand.hbm [shape: f32[128,128], index: 2, kind: input, shape index: {}]   ;;  %s3479_s3 = inlined_call_operand.hbm [shape: f32[128,128], index: 3, kind: input, shape index: {}]   ;;  %s3480_s4 = inlined_call_operand.hbm [shape: f32[1,128], index: 4, kind: input, shape index: {}]   ;;  %s3481_s5 = inlined_call_operand.hbm [shape: f32[128,128], index: 5, kind: input, shape index: {}]   ;;  %s3482_s6 = inlined_call_operand.hbm [shape: f32[128,128], index: 6, kind: input, shape index: {}]   ;;  %s3483_s7 = inlined_call_operand.hbm [shape: f32[1,128], index: 7, kind: input, shape index: {}]   ;;  %s3484_s8 = inlined_call_operand.hbm [shape: f32[128,128], index: 8, kind: input, shape index: {}]   ;;  %s3485_s9 = inlined_call_operand.hbm [shape: f32[1,128], index: 9, kind: input, shape index: {}]   ;;  %s3486_s10 = inlined_call_operand.hbm [shape: f32[128,128], index: 10, kind: input, shape index: {}]   ;;  %s3487_s11 = inlined_call_operand.hbm [shape: f32[1,128], index: 11, kind: input, shape index: {}]   ;;  %s3488_s12 = inlined_call_operand.hbm [shape: f32[2,128], index: 12, kind: output, shape index: {}]  }
   0x1   :  { %18 = vsyncpa [#allocation6], 0 }
   0x2   :  { %19 = vsyncpa [#allocation9], 0 }
   0x3   :  { %20 = vsyncpa [#allocation12], 0 }
   0x4   :  { %21 = vsyncpa [#allocation15], 0 }
   0x5   :  { %22 = vsyncpa [#allocation18], 0 }
   0x6   :  { %23 = vsyncpa [#allocation21], 0 }
   0x7   :  { %24 = vsyncpa [#allocation4], 0  ;;  %s2976_s21 = smov [#allocation5]   ;;  %s2977_s23 = smov [#allocation8]  }
   0x8   :  { %s42_s22 = sshll.u32 %s2976_s21, 4  ;;  %s66_s24 = sshll.u32 %s2977_s23, 4  ;;  %s43_s22 = int_to_ptr.vmem [resolvable:$true] %s42_s22  ;;  %s3059_s24 = int_to_ptr.vmem [resolvable:$true] %s66_s24 }
   0x9   :  { %s2674_s27 = scalar_lea.hbm %s3477_s1, 256 }
   0xa   :  { %p2675_p0 = scmp.ne.s32.totalorder %s3477_s1, %s2674_s27  ;;  %p2678_p1 = scmp.lt.u32.totalorder %s2674_s27, %s3477_s1 }
   0xc   :  { %p2680_p2 = pnand %p2678_p1, %p2675_p0 }
   0xe   :  { %2683 = shalt.err (!%p2680_p2)
}
   0xf   :  { %s2684_s14 = scalar_lea.vmem %s43_s22, 256  ;;  %p2689_p4 = scmp.lt.s32.totalorder %s43_s22, %s43_s22 }
  0x10   :  { %p2685_p3 = scmp.ne.s32.totalorder %s43_s22, %s2684_s14  ;;  %p2690_p5 = scmp.lt.s32.totalorder %s2684_s14, %s2684_s14 }
  0x12   :  { %p2691_p6 = por %p2690_p5, %p2689_p4 }
  0x14   :  { %p2692_p7 = pnand %p2691_p6, %p2685_p3 }
  0x16   :  { %2695 = shalt.err (!%p2692_p7)
}
  0x17   :  { %s2978_s15 = smov 128   ;;  %s2979_s16 = smov 8  }
  0x18   :  { %48 = dma.hbm_to_vmem [thread:$0]  %s3477_s1, 256, %s43_s22, [#allocation6], %s2978_s15, %s2978_s15, %s2979_s16  }
  0x19   :  { %s2696_s21 = scalar_lea.hbm %s3479_s3, 2048 }
  0x1a   :  { %p2697_p8 = scmp.ne.s32.totalorder %s3479_s3, %s2696_s21  ;;  %p2700_p9 = scmp.lt.u32.totalorder %s2696_s21, %s3479_s3 }
  0x1c   :  { %p2702_p10 = pnand %p2700_p9, %p2697_p8 }
  0x1e   :  { %2705 = shalt.err (!%p2702_p10)
}
  0x1f   :  { %s2706_s28 = scalar_lea.vmem %s3059_s24, 2048  ;;  %p2711_p12 = scmp.lt.s32.totalorder %s3059_s24, %s3059_s24 }
  0x20   :  { %p2707_p11 = scmp.ne.s32.totalorder %s3059_s24, %s2706_s28  ;;  %p2712_p13 = scmp.lt.s32.totalorder %s2706_s28, %s2706_s28 }
  0x22   :  { %p2713_p0 = por %p2712_p13, %p2711_p12 }
  0x24   :  { %p2714_p1 = pnand %p2713_p0, %p2707_p11 }
  0x26   :  { %2717 = shalt.err (!%p2714_p1)
}
  0x27   :  { %72 = dma.hbm_to_vmem [thread:$0]  %s3479_s3, 2048, %s3059_s24, [#allocation9], %s2978_s15, %s2978_s15, %s2979_s16  }
  0x28   :  { %s2980_s29 = smov [#allocation11]   ;;  %s2981_s13 = smov [#allocation14]  }
  0x29   :  { %s88_s30 = sshll.u32 %s2980_s29, 4  ;;  %s113_s14 = sshll.u32 %s2981_s13, 4  ;;  %s89_s30 = int_to_ptr.vmem [resolvable:$true] %s88_s30  ;;  %s114_s14 = int_to_ptr.vmem [resolvable:$true] %s113_s14 }
  0x2a   :  { %s2718_s19 = scalar_lea.hbm %s3481_s5, 2048 }
  0x2b   :  { %p2719_p2 = scmp.ne.s32.totalorder %s3481_s5, %s2718_s19  ;;  %p2722_p3 = scmp.lt.u32.totalorder %s2718_s19, %s3481_s5 }
  0x2d   :  { %p2724_p4 = pnand %p2722_p3, %p2719_p2 }
  0x2f   :  { %2727 = shalt.err (!%p2724_p4)
}
  0x30   :  { %s2728_s3 = scalar_lea.vmem %s89_s30, 2048  ;;  %p2733_p6 = scmp.lt.s32.totalorder %s89_s30, %s89_s30 }
  0x31   :  { %p2729_p5 = scmp.ne.s32.totalorder %s89_s30, %s2728_s3  ;;  %p2734_p7 = scmp.lt.s32.totalorder %s2728_s3, %s2728_s3 }
  0x33   :  { %p2735_p8 = por %p2734_p7, %p2733_p6 }
  0x35   :  { %p2736_p9 = pnand %p2735_p8, %p2729_p5 }
  0x37   :  { %2739 = shalt.err (!%p2736_p9)
}
  0x38   :  { %94 = dma.hbm_to_vmem [thread:$0]  %s3481_s5, 2048, %s89_s30, [#allocation12], %s2978_s15, %s2978_s15, %s2979_s16  }
  0x39   :  { %s2740_s1 = scalar_lea.hbm %s3483_s7, 16 }
  0x3a   :  { %p2741_p10 = scmp.ne.s32.totalorder %s3483_s7, %s2740_s1  ;;  %p2744_p11 = scmp.lt.u32.totalorder %s2740_s1, %s3483_s7 }
  0x3c   :  { %p2746_p12 = pnand %p2744_p11, %p2741_p10 }
  0x3e   :  { %2749 = shalt.err (!%p2746_p12)
}
  0x3f   :  { %s2750_s18 = scalar_lea.vmem %s114_s14, 16  ;;  %s2754_s19 = scalar_lea.vmem %s114_s14, 32 }
  0x40   :  { %p2751_p13 = scmp.ne.s32.totalorder %s114_s14, %s2750_s18  ;;  %p2755_p0 = scmp.lt.s32.totalorder %s114_s14, %s114_s14 }
  0x41   :  { %p2756_p1 = scmp.lt.s32.totalorder %s2754_s19, %s2750_s18 }
  0x43   :  { %p2757_p2 = por %p2756_p1, %p2755_p0 }
  0x45   :  { %p2758_p3 = pnand %p2757_p2, %p2751_p13 }
  0x47   :  { %2761 = shalt.err (!%p2758_p3)
}
  0x48   :  { %116 = dma.hbm_to_vmem [thread:$0]  %s3483_s7, 16, %s114_s14, [#allocation15]  }
  0x49   :  { %s2982_s20 = smov [#allocation17]   ;;  %s2983_s23 = smov [#allocation2]  }
  0x4a   :  { %s135_s21 = sshll.u32 %s2982_s20, 4  ;;  %s30_s25 = sshll.u32 %s2983_s23, 4  ;;  %s136_s21 = int_to_ptr.vmem [resolvable:$true] %s135_s21  ;;  %s3123_s25 = int_to_ptr.vmem [resolvable:$true] %s30_s25 }
  0x4b   :  { %s2762_s26 = scalar_lea.hbm %s3485_s9, 16 }
  0x4c   :  { %p2763_p4 = scmp.ne.s32.totalorder %s3485_s9, %s2762_s26  ;;  %p2766_p5 = scmp.lt.u32.totalorder %s2762_s26, %s3485_s9 }
  0x4e   :  { %p2768_p6 = pnand %p2766_p5, %p2763_p4 }
  0x50   :  { %2771 = shalt.err (!%p2768_p6)
}
  0x51   :  { %s2772_s7 = scalar_lea.vmem %s136_s21, 16  ;;  %s2776_s14 = scalar_lea.vmem %s136_s21, 32 }
  0x52   :  { %p2773_p7 = scmp.ne.s32.totalorder %s136_s21, %s2772_s7  ;;  %p2777_p8 = scmp.lt.s32.totalorder %s136_s21, %s136_s21 }
  0x53   :  { %p2778_p9 = scmp.lt.s32.totalorder %s2776_s14, %s2772_s7 }
  0x55   :  { %p2779_p10 = por %p2778_p9, %p2777_p8 }
  0x57   :  { %p2780_p11 = pnand %p2779_p10, %p2773_p7 }
  0x59   :  { %2783 = shalt.err (!%p2780_p11)
}
  0x5a   :  { %138 = dma.hbm_to_vmem [thread:$0]  %s3485_s9, 16, %s136_s21, [#allocation18]  }
  0x5b   :  { %s2784_s19 = scalar_lea.hbm %s3476_s0, 256 }
  0x5c   :  { %p2785_p12 = scmp.ne.s32.totalorder %s3476_s0, %s2784_s19  ;;  %p2788_p13 = scmp.lt.u32.totalorder %s2784_s19, %s3476_s0 }
  0x5e   :  { %p2790_p0 = pnand %p2788_p13, %p2785_p12 }
  0x60   :  { %2793 = shalt.err (!%p2790_p0)
}
  0x61   :  { %s2794_s3 = scalar_lea.vmem %s3123_s25, 256  ;;  %p2799_p2 = scmp.lt.s32.totalorder %s3123_s25, %s3123_s25 }
  0x62   :  { %p2795_p1 = scmp.ne.s32.totalorder %s3123_s25, %s2794_s3  ;;  %p2800_p3 = scmp.lt.s32.totalorder %s2794_s3, %s2794_s3 }
  0x64   :  { %p2801_p4 = por %p2800_p3, %p2799_p2 }
  0x66   :  { %p2802_p5 = pnand %p2801_p4, %p2795_p1 }
  0x68   :  { %2805 = shalt.err (!%p2802_p5)
}
  0x69   :  { %36 = dma.hbm_to_vmem [thread:$0]  %s3476_s0, 256, %s3123_s25, [#allocation3], %s2978_s15, %s2978_s15, %s2979_s16  }
  0x6a   :  { %s2984_s24 = smov [#allocation7]   ;;  %s2985_s27 = smov [#allocation10]  }
  0x6b   :  { %s54_s26 = sshll.u32 %s2984_s24, 4  ;;  %s79_s28 = sshll.u32 %s2985_s27, 4  ;;  %s55_s26 = int_to_ptr.vmem [resolvable:$true] %s54_s26  ;;  %s80_s28 = int_to_ptr.vmem [resolvable:$true] %s79_s28 }
  0x6c   :  { %s2806_s7 = scalar_lea.hbm %s3478_s2, 2048 }
  0x6d   :  { %p2807_p6 = scmp.ne.s32.totalorder %s3478_s2, %s2806_s7  ;;  %p2810_p7 = scmp.lt.u32.totalorder %s2806_s7, %s3478_s2 }
  0x6f   :  { %p2812_p8 = pnand %p2810_p7, %p2807_p6 }
  0x71   :  { %2815 = shalt.err (!%p2812_p8)
}
  0x72   :  { %s2816_s0 = scalar_lea.vmem %s55_s26, 2048  ;;  %p2821_p10 = scmp.lt.s32.totalorder %s55_s26, %s55_s26 }
  0x73   :  { %p2817_p9 = scmp.ne.s32.totalorder %s55_s26, %s2816_s0  ;;  %p2822_p11 = scmp.lt.s32.totalorder %s2816_s0, %s2816_s0 }
  0x75   :  { %p2823_p12 = por %p2822_p11, %p2821_p10 }
  0x77   :  { %p2824_p13 = pnand %p2823_p12, %p2817_p9 }
  0x79   :  { %2827 = shalt.err (!%p2824_p13)
}
  0x7a   :  { %60 = dma.hbm_to_vmem [thread:$0]  %s3478_s2, 2048, %s55_s26, [#allocation6], %s2978_s15, %s2978_s15, %s2979_s16  }
  0x7b   :  { %s2828_s30 = scalar_lea.hbm %s3480_s4, 16 }
  0x7c   :  { %p2829_p0 = scmp.ne.s32.totalorder %s3480_s4, %s2828_s30  ;;  %p2832_p1 = scmp.lt.u32.totalorder %s2828_s30, %s3480_s4 }
  0x7e   :  { %p2834_p2 = pnand %p2832_p1, %p2829_p0 }
  0x80   :  { %2837 = shalt.err (!%p2834_p2)
}
  0x81   :  { %s2838_s21 = scalar_lea.vmem %s80_s28, 16  ;;  %s2842_s24 = scalar_lea.vmem %s80_s28, 32 }
  0x82   :  { %p2839_p3 = scmp.ne.s32.totalorder %s80_s28, %s2838_s21  ;;  %p2843_p4 = scmp.lt.s32.totalorder %s80_s28, %s80_s28 }
  0x83   :  { %p2844_p5 = scmp.lt.s32.totalorder %s2842_s24, %s2838_s21 }
  0x85   :  { %p2845_p6 = por %p2844_p5, %p2843_p4 }
  0x87   :  { %p2846_p7 = pnand %p2845_p6, %p2839_p3 }
  0x89   :  { %2849 = shalt.err (!%p2846_p7)
}
  0x8a   :  { %82 = dma.hbm_to_vmem [thread:$0]  %s3480_s4, 16, %s80_s28, [#allocation9]  }
  0x8b   :  { %s2986_s27 = smov [#allocation13]   ;;  %s2987_s22 = smov [#allocation16]  }
  0x8c   :  { %s100_s1 = sshll.u32 %s2986_s27, 4  ;;  %s122_s7 = sshll.u32 %s2987_s22, 4  ;;  %s101_s1 = int_to_ptr.vmem [resolvable:$true] %s100_s1  ;;  %s3184_s7 = int_to_ptr.vmem [resolvable:$true] %s122_s7 }
  0x8d   :  { %s2850_s13 = scalar_lea.hbm %s3482_s6, 2048 }
  0x8e   :  { %p2851_p8 = scmp.ne.s32.totalorder %s3482_s6, %s2850_s13  ;;  %p2854_p9 = scmp.lt.u32.totalorder %s2850_s13, %s3482_s6 }
  0x90   :  { %p2856_p10 = pnand %p2854_p9, %p2851_p8 }
  0x92   :  { %2859 = shalt.err (!%p2856_p10)
}
  0x93   :  { %s2860_s4 = scalar_lea.vmem %s101_s1, 2048  ;;  %p2865_p12 = scmp.lt.s32.totalorder %s101_s1, %s101_s1 }
  0x94   :  { %p2861_p11 = scmp.ne.s32.totalorder %s101_s1, %s2860_s4  ;;  %p2866_p13 = scmp.lt.s32.totalorder %s2860_s4, %s2860_s4 }
  0x96   :  { %p2867_p0 = por %p2866_p13, %p2865_p12 }
  0x98   :  { %p2868_p1 = pnand %p2867_p0, %p2861_p11 }
  0x9a   :  { %2871 = shalt.err (!%p2868_p1)
}
  0x9b   :  { %106 = dma.hbm_to_vmem [thread:$0]  %s3482_s6, 2048, %s101_s1, [#allocation12], %s2978_s15, %s2978_s15, %s2979_s16  }
  0x9c   :  { %s2872_s20 = scalar_lea.hbm %s3484_s8, 2048 }
  0x9d   :  { %p2873_p2 = scmp.ne.s32.totalorder %s3484_s8, %s2872_s20  ;;  %p2876_p3 = scmp.lt.u32.totalorder %s2872_s20, %s3484_s8 }
  0x9f   :  { %p2878_p4 = pnand %p2876_p3, %p2873_p2 }
  0xa1   :  { %2881 = shalt.err (!%p2878_p4)
}
  0xa2   :  { %s2882_s24 = scalar_lea.vmem %s3184_s7, 2048  ;;  %p2887_p6 = scmp.lt.s32.totalorder %s3184_s7, %s3184_s7 }
  0xa3   :  { %p2883_p5 = scmp.ne.s32.totalorder %s3184_s7, %s2882_s24  ;;  %p2888_p7 = scmp.lt.s32.totalorder %s2882_s24, %s2882_s24 }
  0xa5   :  { %p2889_p8 = por %p2888_p7, %p2887_p6 }
  0xa7   :  { %p2890_p9 = pnand %p2889_p8, %p2883_p5 }
  0xa9   :  { %2893 = shalt.err (!%p2890_p9)
}
  0xaa   :  { %128 = dma.hbm_to_vmem [thread:$0]  %s3484_s8, 2048, %s3184_s7, [#allocation15], %s2978_s15, %s2978_s15, %s2979_s16  }
  0xab   :  { %s2988_s26 = smov [#allocation19]   ;;  %s2989_s1 = smov [#allocation20]  }
  0xac   :  { %s144_s27 = sshll.u32 %s2988_s26, 4  ;;  %s157_s22 = sshll.u32 %s2989_s1, 4  ;;  %s145_s27 = int_to_ptr.vmem [resolvable:$true] %s144_s27  ;;  %s158_s22 = int_to_ptr.vmem [resolvable:$true] %s157_s22 }
  0xad   :  { %s2894_s13 = scalar_lea.hbm %s3486_s10, 2048 }
  0xae   :  { %p2895_p10 = scmp.ne.s32.totalorder %s3486_s10, %s2894_s13  ;;  %p2898_p11 = scmp.lt.u32.totalorder %s2894_s13, %s3486_s10 }
  0xb0   :  { %p2900_p12 = pnand %p2898_p11, %p2895_p10 }
  0xb2   :  { %2903 = shalt.err (!%p2900_p12)
}
  0xb3   :  { %s2904_s8 = scalar_lea.vmem %s145_s27, 2048  ;;  %p2909_p0 = scmp.lt.s32.totalorder %s145_s27, %s145_s27 }
  0xb4   :  { %p2905_p13 = scmp.ne.s32.totalorder %s145_s27, %s2904_s8  ;;  %p2910_p1 = scmp.lt.s32.totalorder %s2904_s8, %s2904_s8 }
  0xb6   :  { %p2911_p2 = por %p2910_p1, %p2909_p0 }
  0xb8   :  { %p2912_p3 = pnand %p2911_p2, %p2905_p13 }
  0xba   :  { %2915 = shalt.err (!%p2912_p3)
}
  0xbb   :  { %150 = dma.hbm_to_vmem [thread:$0]  %s3486_s10, 2048, %s145_s27, [#allocation18], %s2978_s15, %s2978_s15, %s2979_s16  }
  0xbc   :  { %s2916_s5 = scalar_lea.hbm %s3487_s11, 16 }
  0xbd   :  { %p2917_p4 = scmp.ne.s32.totalorder %s3487_s11, %s2916_s5  ;;  %p2920_p5 = scmp.lt.u32.totalorder %s2916_s5, %s3487_s11 }
  0xbf   :  { %p2922_p6 = pnand %p2920_p5, %p2917_p4 }
  0xc1   :  { %2925 = shalt.err (!%p2922_p6)
}
  0xc2   :  { %s2926_s9 = scalar_lea.vmem %s158_s22, 16  ;;  %s2930_s21 = scalar_lea.vmem %s158_s22, 32 }
  0xc3   :  { %p2927_p7 = scmp.ne.s32.totalorder %s158_s22, %s2926_s9  ;;  %p2931_p8 = scmp.lt.s32.totalorder %s158_s22, %s158_s22 }
  0xc4   :  { %p2932_p9 = scmp.lt.s32.totalorder %s2930_s21, %s2926_s9 }
  0xc6   :  { %p2933_p10 = por %p2932_p9, %p2931_p8 }
  0xc8   :  { %p2934_p11 = pnand %p2933_p10, %p2927_p7 }
  0xca   :  { %2937 = shalt.err (!%p2934_p11)
}
  0xcb   :  { %160 = dma.hbm_to_vmem [thread:$0]  %s3487_s11, 16, %s158_s22, [#allocation21]  }
  0xcc   :  { %2960 = dma.done.wait [#allocation3], 256  }
  0xcd   :  { %2961 = vsyncadd [#allocation3], 4294967040 }
  0xce   :  { %2962 = dma.done.wait [#allocation6], 2304  }
  0xcf   :  { %2963 = vsyncadd [#allocation6], 4294964992 }
  0xd0   :  { %2964 = dma.done.wait [#allocation9], 2064  }
  0xd1   :  { %2965 = vsyncadd [#allocation9], 4294965232 }
  0xd2   :  { %2966 = dma.done.wait [#allocation12], 4096  }
  0xd3   :  { %2967 = vsyncadd [#allocation12], 4294963200 }
  0xd4   :  { %2968 = dma.done.wait [#allocation15], 2064  }
  0xd5   :  { %2969 = vsyncadd [#allocation15], 4294965232 }
  0xd6   :  { %2970 = dma.done.wait [#allocation18], 2064  }
  0xd7   :  { %2971 = vsyncadd [#allocation18], 4294965232 }
  0xd8   :  { %2972 = dma.done.wait [#allocation21], 16  }
  0xd9   :  { %2973 = vsyncadd [#allocation21], 4294967280  ;;  %vm201_vm0 = vcmask 130048   ;;  %v199_v0 = vld [vmem:[#allocation2] sm:$0xff]  ;;  %v200_v1 = vld [vmem:[#allocation2 + $0x8] sm:$0xff]  ;;  %vm2991_vm1 = vmmov 0  }
  0xda   :  { %v3248_v2 = vld [vmem:[#allocation5] sm:$0xff]  ;;  %v2258_v3 = vpack.c.bf16 %v200_v1, %v199_v0  ;;  %v299_v4 = vld [vmem:[#allocation8] sm:$0xff]  ;;  %v300_v5 = vld [vmem:[#allocation8 + $0x8] sm:$0xff]  ;;  %vm1239_vm2 = vcmask 1041409   ;;  %s2993_s11 = smov [#allocation22]  }
  0xdb   :  { %1814 = vmatprep.mubr.msk.f32.mxu1 %vm201_vm0, %v3248_v2  ;;  %1891 = vmatprep.mubr.msk.f32.mxu0 %vm201_vm0, %v3248_v2  ;;  %v2262_v6 = vpack.c.bf16 %v300_v5, %v299_v4  ;;  %v301_v7 = vld [vmem:[#allocation8 + $0x10] sm:$0xff]  ;;  %v302_v8 = vld [vmem:[#allocation8 + $0x18] sm:$0xff]  ;;  %v303_v11 = vld [vmem:[#allocation8 + $0x20] sm:$0xff]  ;;  %s1555_s16 = sshll.u32 %s2993_s11, 4  ;;  %s1556_s16 = int_to_ptr.vmem [resolvable:$true] %s1555_s16 }
  0xdc   :  { %2259 = vmatprep.subr.bf16.mxu1 %v2258_v3  ;;  %v3254_v9 = vld [vmem:[#allocation5 + $0x8] sm:$0xff]  ;;  %v2266_v10 = vpack.c.bf16 %v302_v8, %v301_v7  ;;  %v304_v12 = vld [vmem:[#allocation8 + $0x28] sm:$0xff]  ;;  %v305_v14 = vld [vmem:[#allocation8 + $0x30] sm:$0xff]  ;;  %s2938_s24 = scalar_lea.vmem %s1556_s16, 32  ;;  %p2943_p13 = scmp.lt.s32.totalorder %s1556_s16, %s1556_s16 }
  0xdd   :  { %2261 = vmatpush3.bf16.msra.mxu1 %v2258_v3  ;;  %v2270_v13 = vpack.c.bf16 %v304_v12, %v303_v11  ;;  %v306_v15 = vld [vmem:[#allocation8 + $0x38] sm:$0xff]  ;;  %v307_v17 = vld [vmem:[#allocation8 + $0x40] sm:$0xff]  ;;  %v308_v18 = vld [vmem:[#allocation8 + $0x48] sm:$0xff]  ;;  %p2939_p12 = scmp.ne.s32.totalorder %s1556_s16, %s2938_s24  ;;  %p2944_p0 = scmp.lt.s32.totalorder %s2938_s24, %s2938_s24 }
  0xde   :  { %2263 = vmatprep.subr.bf16.mxu1 %v2262_v6  ;;  %v2274_v16 = vpack.c.bf16 %v306_v15, %v305_v14  ;;  %v2278_v19 = vpack.c.bf16 %v308_v18, %v307_v17  ;;  %v309_v20 = vld [vmem:[#allocation8 + $0x50] sm:$0xff]  ;;  %v310_v21 = vld [vmem:[#allocation8 + $0x58] sm:$0xff]  ;;  %v311_v23 = vld [vmem:[#allocation8 + $0x60] sm:$0xff] }
  0xdf   :  { %v2282_v22 = vpack.c.bf16 %v310_v21, %v309_v20  ;;  %v312_v24 = vld [vmem:[#allocation8 + $0x68] sm:$0xff]  ;;  %v313_v26 = vld [vmem:[#allocation8 + $0x70] sm:$0xff]  ;;  %v314_v27 = vld [vmem:[#allocation8 + $0x78] sm:$0xff]  ;;  %p2945_p1 = por %p2944_p0, %p2943_p13 }
  0xe0   :  { %1815 = vmatmul.mubr.msk.f32.vlgmr.msra.gmra.mrb[0].mxu1 %vm201_vm0, %v3254_v9  ;;  %v2286_v25 = vpack.c.bf16 %v312_v24, %v311_v23  ;;  %v2290_v28 = vpack.c.bf16 %v314_v27, %v313_v26  ;;  %v283_v29 = vld [vmem:[#allocation7] sm:$0xff]  ;;  %v284_v30 = vld [vmem:[#allocation7 + $0x8] sm:$0xff]  ;;  %v285_v32 = vld [vmem:[#allocation7 + $0x10] sm:$0xff] }
  0xe1   :  { %2265 = vmatpush3.bf16.msra.mxu1 %v2262_v6  ;;  %1849 = vmatprep.mubr.f32.mxu1 %v199_v0  ;;  %v2294_v31 = vpack.c.bf16 %v284_v30, %v283_v29  ;;  %v286_v33 = vld [vmem:[#allocation7 + $0x18] sm:$0xff]  ;;  %v287_v35 = vld [vmem:[#allocation7 + $0x20] sm:$0xff]  ;;  %v288_v36 = vld [vmem:[#allocation7 + $0x28] sm:$0xff]  ;;  %p2946_p2 = pnand %p2945_p1, %p2939_p12 }
  0xe2   :  { %2267 = vmatprep.subr.bf16.mxu1 %v2266_v10  ;;  %v2298_v34 = vpack.c.bf16 %v286_v33, %v285_v32  ;;  %v2302_v37 = vpack.c.bf16 %v288_v36, %v287_v35  ;;  %v289_v38 = vld [vmem:[#allocation7 + $0x30] sm:$0xff]  ;;  %v290_v39 = vld [vmem:[#allocation7 + $0x38] sm:$0xff]  ;;  %v291_v41 = vld [vmem:[#allocation7 + $0x40] sm:$0xff] }
  0xe3   :  { %v2306_v40 = vpack.c.bf16 %v290_v39, %v289_v38  ;;  %v292_v42 = vld [vmem:[#allocation7 + $0x48] sm:$0xff]  ;;  %v293_v44 = vld [vmem:[#allocation7 + $0x50] sm:$0xff]  ;;  %v294_v45 = vld [vmem:[#allocation7 + $0x58] sm:$0xff] }
  0xe4   :  { %v2310_v43 = vpack.c.bf16 %v292_v42, %v291_v41  ;;  %v2314_v46 = vpack.c.bf16 %v294_v45, %v293_v44  ;;  %v295_v47 = vld [vmem:[#allocation7 + $0x60] sm:$0xff]  ;;  %v296_v48 = vld [vmem:[#allocation7 + $0x68] sm:$0xff]  ;;  %v297_v50 = vld [vmem:[#allocation7 + $0x70] sm:$0xff] }
  0xe5   :  { %2269 = vmatpush3.bf16.msra.mxu1 %v2266_v10  ;;  %v2318_v49 = vpack.c.bf16 %v296_v48, %v295_v47  ;;  %v298_v51 = vld [vmem:[#allocation7 + $0x78] sm:$0xff]  ;;  %v1572_v55 = vld [vmem:[#allocation10] ss:$0 sm:$0xff]  ;;  %v567_v60 = vld [vmem:[#allocation13] sm:$0xff] }
  0xe6   :  { %2271 = vmatprep.subr.bf16.mxu1 %v2270_v13  ;;  %v2322_v52 = vpack.c.bf16 %v298_v51, %v297_v50  ;;  %v568_v61 = vld [vmem:[#allocation13 + $0x8] sm:$0xff]  ;;  %v569_v3 = vld [vmem:[#allocation13 + $0x10] sm:$0xff]  ;;  %v570_v4 = vld [vmem:[#allocation13 + $0x18] sm:$0xff] }
  0xe7   :  { %v3263_v5 = vpack.c.bf16 %v570_v4, %v569_v3  ;;  %v571_v6 = vld [vmem:[#allocation13 + $0x20] sm:$0xff]  ;;  %v572_v7 = vld [vmem:[#allocation13 + $0x28] sm:$0xff]  ;;  %v573_v10 = vld [vmem:[#allocation13 + $0x30] sm:$0xff] }
  0xe8   :  { %v3269_v8 = vpack.c.bf16 %v572_v7, %v571_v6  ;;  %v574_v11 = vld [vmem:[#allocation13 + $0x38] sm:$0xff]  ;;  %v576_v14 = vld [vmem:[#allocation13 + $0x48] sm:$0xff]  ;;  %v3328_v51 = vld [vmem:[#allocation14] ss:$0 sm:$0xff] }
  0xe9   :  { %2273 = vmatpush3.bf16.msra.mxu1 %v2270_v13  ;;  %v3273_v12 = vpack.c.bf16 %v574_v11, %v573_v10  ;;  %v575_v13 = vld [vmem:[#allocation13 + $0x40] sm:$0xff]  ;;  %v578_v17 = vld [vmem:[#allocation13 + $0x58] sm:$0xff]  ;;  %v580_v20 = vld [vmem:[#allocation13 + $0x68] sm:$0xff] }
  0xea   :  { %2275 = vmatprep.subr.bf16.mxu1 %v2274_v16  ;;  %v3277_v15 = vpack.c.bf16 %v576_v14, %v575_v13  ;;  %v582_v23 = vld [vmem:[#allocation13 + $0x78] sm:$0xff]  ;;  %v552_v26 = vld [vmem:[#allocation11 + $0x8] sm:$0xff] }
  0xeb   :  { %v554_v29 = vld [vmem:[#allocation11 + $0x18] sm:$0xff]  ;;  %v556_v32 = vld [vmem:[#allocation11 + $0x28] sm:$0xff] }
  0xec   :  { %v558_v35 = vld [vmem:[#allocation11 + $0x38] sm:$0xff]  ;;  %v560_v38 = vld [vmem:[#allocation11 + $0x48] sm:$0xff] }
  0xed   :  { %2277 = vmatpush3.bf16.msra.mxu1 %v2274_v16  ;;  %v577_v16 = vld [vmem:[#allocation13 + $0x50] sm:$0xff]  ;;  %v562_v41 = vld [vmem:[#allocation11 + $0x58] sm:$0xff]  ;;  %v564_v44 = vld [vmem:[#allocation11 + $0x68] sm:$0xff] }
  0xee   :  { %2279 = vmatprep.subr.bf16.mxu1 %v2278_v19  ;;  %v3281_v18 = vpack.c.bf16 %v578_v17, %v577_v16  ;;  %v566_v47 = vld [vmem:[#allocation11 + $0x78] sm:$0xff]  ;;  %v1218_v13 = vld [vmem:[#allocation16 + $0x20] sm:$0xff]  ;;  %v1219_v14 = vld [vmem:[#allocation16 + $0x28] sm:$0xff] }
  0xef   :  { %v1216_v10 = vld [vmem:[#allocation16 + $0x10] sm:$0xff]  ;;  %v1217_v11 = vld [vmem:[#allocation16 + $0x18] sm:$0xff] }
  0xf0   :  { %v1220_v16 = vld [vmem:[#allocation16 + $0x30] sm:$0xff]  ;;  %v1221_v17 = vld [vmem:[#allocation16 + $0x38] sm:$0xff] }
  0xf1   :  { %2281 = vmatpush3.bf16.msra.mxu1 %v2278_v19  ;;  %v579_v19 = vld [vmem:[#allocation13 + $0x60] sm:$0xff] }
  0xf2   :  { %2283 = vmatprep.subr.bf16.mxu1 %v2282_v22  ;;  %v3285_v21 = vpack.c.bf16 %v580_v20, %v579_v19  ;;  %v1222_v19 = vld [vmem:[#allocation16 + $0x40] sm:$0xff]  ;;  %v1223_v20 = vld [vmem:[#allocation16 + $0x48] sm:$0xff] }
  0xf5   :  { %2285 = vmatpush3.bf16.msra.mxu1 %v2282_v22  ;;  %v581_v22 = vld [vmem:[#allocation13 + $0x70] sm:$0xff] }
  0xf6   :  { %2287 = vmatprep.subr.bf16.mxu1 %v2286_v25  ;;  %v3289_v24 = vpack.c.bf16 %v582_v23, %v581_v22  ;;  %v1224_v22 = vld [vmem:[#allocation16 + $0x50] sm:$0xff]  ;;  %v1225_v23 = vld [vmem:[#allocation16 + $0x58] sm:$0xff] }
  0xf9   :  { %2289 = vmatpush3.bf16.msra.mxu1 %v2286_v25  ;;  %v551_v25 = vld [vmem:[#allocation11] sm:$0xff] }
  0xfa   :  { %2291 = vmatprep.subr.bf16.mxu1 %v2290_v28  ;;  %v3293_v27 = vpack.c.bf16 %v552_v26, %v551_v25  ;;  %v1226_v25 = vld [vmem:[#allocation16 + $0x60] sm:$0xff]  ;;  %v1227_v26 = vld [vmem:[#allocation16 + $0x68] sm:$0xff] }
  0xfd   :  { %2293 = vmatpush3.bf16.msra.mxu1 %v2290_v28  ;;  %v553_v28 = vld [vmem:[#allocation11 + $0x10] sm:$0xff] }
  0xfe   :  { %2295 = vmatprep.subr.bf16.mxu1 %v2294_v31  ;;  %v3297_v30 = vpack.c.bf16 %v554_v29, %v553_v28  ;;  %v2549_v28 = vpack.c.bf16 %v1227_v26, %v1226_v25  ;;  %v1228_v29 = vld [vmem:[#allocation16 + $0x70] sm:$0xff]  ;;  %v1581_v25 = vld [vmem:[#allocation20] ss:$0 sm:$0xff] }
 0x100   :  { %1850 = vmatmul.mubr.f32.vlgmr.msra.gmra.mrb[2].mxu1 %v200_v1  ;;  %v3260_v1 = vpack.c.bf16 %v568_v61, %v567_v60 }
 0x101   :  { %2297 = vmatpush3.bf16.msra.mxu1 %v2294_v31  ;;  %v555_v31 = vld [vmem:[#allocation11 + $0x20] sm:$0xff] }
 0x102   :  { %2299 = vmatprep.subr.bf16.mxu1 %v2298_v34  ;;  %v3301_v33 = vpack.c.bf16 %v556_v32, %v555_v31 }
 0x105   :  { %2301 = vmatpush3.bf16.msra.mxu1 %v2298_v34  ;;  %v557_v34 = vld [vmem:[#allocation11 + $0x30] sm:$0xff] }
 0x106   :  { %2303 = vmatprep.subr.bf16.mxu1 %v2302_v37  ;;  %v3305_v36 = vpack.c.bf16 %v558_v35, %v557_v34 }
 0x109   :  { %2305 = vmatpush3.bf16.msra.mxu1 %v2302_v37  ;;  %v559_v37 = vld [vmem:[#allocation11 + $0x40] sm:$0xff] }
 0x10a   :  { %2307 = vmatprep.subr.bf16.mxu1 %v2306_v40  ;;  %v3309_v39 = vpack.c.bf16 %v560_v38, %v559_v37 }
 0x10d   :  { %2309 = vmatpush3.bf16.msra.mxu1 %v2306_v40  ;;  %v561_v40 = vld [vmem:[#allocation11 + $0x50] sm:$0xff] }
 0x10e   :  { %2311 = vmatprep.subr.bf16.mxu1 %v2310_v43  ;;  %v3313_v42 = vpack.c.bf16 %v562_v41, %v561_v40 }
 0x111   :  { %2313 = vmatpush3.bf16.msra.mxu1 %v2310_v43  ;;  %v563_v43 = vld [vmem:[#allocation11 + $0x60] sm:$0xff] }
 0x112   :  { %2315 = vmatprep.subr.bf16.mxu1 %v2314_v46  ;;  %v3317_v45 = vpack.c.bf16 %v564_v44, %v563_v43 }
 0x115   :  { %2317 = vmatpush3.bf16.msra.mxu1 %v2314_v46  ;;  %v565_v46 = vld [vmem:[#allocation11 + $0x70] sm:$0xff] }
 0x116   :  { %2319 = vmatprep.subr.bf16.mxu1 %v2318_v49  ;;  %v3321_v48 = vpack.c.bf16 %v566_v47, %v565_v46 }
 0x119   :  { %2321 = vmatpush3.bf16.msra.mxu1 %v2318_v49 }
 0x11a   :  { %2323 = vmatprep.subr.bf16.mxu1 %v2322_v52 }
 0x11d   :  { %2325 = vmatpush3.bf16.msra.mxu1 %v2322_v52 }
 0x1b3   :  { %v1816_v53 = vpop.f32.mrb[0].mxu1 }
 0x1b4   :  { %v274_v54 = vpop.f32.mrb[1].mxu1 }
 0x1b5   :  { %1884 = vmatprep.mubr.f32.mxu1 %v274_v54 }
 0x1b6   :  { %1885 = vmatmul.mubr.f32.vlgmr.msra.gmra.mrb[2].mxu1 %v1816_v53 }
 0x1b7   :  { %1968 = vmatprep.mubr.msk.f32.mxu1 %vm201_vm0, %v3248_v2 }
 0x289   :  { %v1886_v56 = vpop.f32.mrb[2].mxu1 }
 0x28a   :  { %v473_v57 = vadd.f32 %v1886_v56, %v1572_v55  ;;  %v456_v58 = vpop.f32.mrb[3].mxu1 }
 0x28b   :  { %v472_v59 = vadd.f32 %v1572_v55, %v456_v58 }
 0x28c   :  { %2652 = vtanh.f32 %v473_v57 }
 0x28d   :  { %2654 = vtanh.f32 %v472_v59 }
 0x296   :  { %v2653_v62 = vpop.eup %2652 }
 0x297   :  { %v2655_v63 = vpop.eup %2654 }
 0x298   :  { %v2326_v0 = vpack.c.bf16 %v2653_v62, %v2655_v63 }
 0x29a   :  { %2327 = vmatprep.subr.bf16.mxu0 %v2326_v0 }
 0x29b   :  { %2329 = vmatpush3.bf16.msra.mxu0 %v2326_v0 }
 0x29c   :  { %2331 = vmatprep.subr.bf16.mxu0 %v3260_v1 }
 0x29e   :  { %1892 = vmatmul.mubr.msk.f32.vlgmr.msra.gmra.mrb[0].mxu0 %vm201_vm0, %v3254_v9 }
 0x29f   :  { %2333 = vmatpush3.bf16.msra.mxu0 %v3260_v1  ;;  %1926 = vmatprep.mubr.f32.mxu0 %v2655_v63 }
 0x2a0   :  { %2335 = vmatprep.subr.bf16.mxu0 %v3263_v5 }
 0x2a3   :  { %2337 = vmatpush3.bf16.msra.mxu0 %v3263_v5 }
 0x2a4   :  { %2339 = vmatprep.subr.bf16.mxu0 %v3269_v8 }
 0x2a7   :  { %2341 = vmatpush3.bf16.msra.mxu0 %v3269_v8 }
 0x2a8   :  { %2343 = vmatprep.subr.bf16.mxu0 %v3273_v12 }
 0x2ab   :  { %2345 = vmatpush3.bf16.msra.mxu0 %v3273_v12 }
 0x2ac   :  { %2347 = vmatprep.subr.bf16.mxu0 %v3277_v15 }
 0x2af   :  { %2349 = vmatpush3.bf16.msra.mxu0 %v3277_v15 }
 0x2b0   :  { %2351 = vmatprep.subr.bf16.mxu0 %v3281_v18 }
 0x2b3   :  { %2353 = vmatpush3.bf16.msra.mxu0 %v3281_v18 }
 0x2b4   :  { %2355 = vmatprep.subr.bf16.mxu0 %v3285_v21 }
 0x2b7   :  { %2357 = vmatpush3.bf16.msra.mxu0 %v3285_v21 }
 0x2b8   :  { %2359 = vmatprep.subr.bf16.mxu0 %v3289_v24 }
 0x2bb   :  { %2361 = vmatpush3.bf16.msra.mxu0 %v3289_v24 }
 0x2bc   :  { %2363 = vmatprep.subr.bf16.mxu0 %v3293_v27 }
 0x2be   :  { %1927 = vmatmul.mubr.f32.vlgmr.msra.gmra.mrb[2].mxu0 %v2653_v62 }
 0x2bf   :  { %2365 = vmatpush3.bf16.msra.mxu0 %v3293_v27 }
 0x2c0   :  { %2367 = vmatprep.subr.bf16.mxu0 %v3297_v30 }
 0x2c3   :  { %2369 = vmatpush3.bf16.msra.mxu0 %v3297_v30 }
 0x2c4   :  { %2371 = vmatprep.subr.bf16.mxu0 %v3301_v33 }
 0x2c7   :  { %2373 = vmatpush3.bf16.msra.mxu0 %v3301_v33 }
 0x2c8   :  { %2375 = vmatprep.subr.bf16.mxu0 %v3305_v36 }
 0x2cb   :  { %2377 = vmatpush3.bf16.msra.mxu0 %v3305_v36 }
 0x2cc   :  { %2379 = vmatprep.subr.bf16.mxu0 %v3309_v39 }
 0x2cf   :  { %2381 = vmatpush3.bf16.msra.mxu0 %v3309_v39 }
 0x2d0   :  { %2383 = vmatprep.subr.bf16.mxu0 %v3313_v42 }
 0x2d3   :  { %2385 = vmatpush3.bf16.msra.mxu0 %v3313_v42 }
 0x2d4   :  { %2387 = vmatprep.subr.bf16.mxu0 %v3317_v45 }
 0x2d7   :  { %2389 = vmatpush3.bf16.msra.mxu0 %v3317_v45 }
 0x2d8   :  { %2391 = vmatprep.subr.bf16.mxu0 %v3321_v48 }
 0x2db   :  { %2393 = vmatpush3.bf16.msra.mxu0 %v3321_v48 }
 0x371   :  { %v1893_v49 = vpop.f32.mrb[0].mxu0 }
 0x372   :  { %v542_v50 = vpop.f32.mrb[1].mxu0 }
 0x373   :  { %1961 = vmatprep.mubr.f32.mxu0 %v542_v50 }
 0x374   :  { %1962 = vmatmul.mubr.f32.vlgmr.msra.gmra.mrb[2].mxu0 %v1893_v49 }
 0x375   :  { %2045 = vmatprep.mubr.msk.f32.mxu0 %vm201_vm0, %v3248_v2 }
 0x447   :  { %v1963_v52 = vpop.f32.mrb[2].mxu0 }
 0x448   :  { %v741_v53 = vadd.f32 %v1963_v52, %v3328_v51  ;;  %v724_v54 = vpop.f32.mrb[3].mxu0 }
 0x449   :  { %v740_v55 = vadd.f32 %v3328_v51, %v724_v54 }
 0x44a   :  { %2656 = vtanh.f32 %v741_v53 }
 0x44b   :  { %2658 = vtanh.f32 %v740_v55 }
 0x454   :  { %v2657_v56 = vpop.eup %2656 }
 0x455   :  { %v2659_v57 = vpop.eup %2658 }
 0x456   :  { %v2394_v58 = vpack.c.bf16 %v2657_v56, %v2659_v57 }
 0x458   :  { %2395 = vmatprep.subr.bf16.mxu1 %v2394_v58 }
 0x459   :  { %2397 = vmatpush3.bf16.msra.mxu1 %v2394_v58  ;;  %v1457_v58 = vld [vmem:[#allocation19 + $0x10] sm:$0xff] }
 0x45a   :  { %2399 = vmatprep.subr.bf16.mxu1 %v3260_v1 }
 0x45c   :  { %1969 = vmatmul.mubr.msk.f32.vlgmr.msra.gmra.mrb[4].mxu1 %vm201_vm0, %v3254_v9 }
 0x45d   :  { %2401 = vmatpush3.bf16.msra.mxu1 %v3260_v1  ;;  %2003 = vmatprep.mubr.f32.mxu1 %v2659_v57  ;;  %v1456_v57 = vld [vmem:[#allocation19 + $0x8] sm:$0xff] }
 0x45e   :  { %2403 = vmatprep.subr.bf16.mxu1 %v3263_v5 }
 0x461   :  { %2405 = vmatpush3.bf16.msra.mxu1 %v3263_v5 }
 0x462   :  { %2407 = vmatprep.subr.bf16.mxu1 %v3269_v8 }
 0x465   :  { %2409 = vmatpush3.bf16.msra.mxu1 %v3269_v8 }
 0x466   :  { %2411 = vmatprep.subr.bf16.mxu1 %v3273_v12 }
 0x469   :  { %2413 = vmatpush3.bf16.msra.mxu1 %v3273_v12 }
 0x46a   :  { %2415 = vmatprep.subr.bf16.mxu1 %v3277_v15 }
 0x46d   :  { %2417 = vmatpush3.bf16.msra.mxu1 %v3277_v15 }
 0x46e   :  { %2419 = vmatprep.subr.bf16.mxu1 %v3281_v18 }
 0x471   :  { %2421 = vmatpush3.bf16.msra.mxu1 %v3281_v18 }
 0x472   :  { %2423 = vmatprep.subr.bf16.mxu1 %v3285_v21 }
 0x475   :  { %2425 = vmatpush3.bf16.msra.mxu1 %v3285_v21 }
 0x476   :  { %2427 = vmatprep.subr.bf16.mxu1 %v3289_v24 }
 0x479   :  { %2429 = vmatpush3.bf16.msra.mxu1 %v3289_v24 }
 0x47a   :  { %2431 = vmatprep.subr.bf16.mxu1 %v3293_v27 }
 0x47c   :  { %2004 = vmatmul.mubr.f32.vlgmr.msra.gmra.mrb[6].mxu1 %v2657_v56  ;;  %v1455_v56 = vld [vmem:[#allocation19] sm:$0xff] }
 0x47d   :  { %2433 = vmatpush3.bf16.msra.mxu1 %v3293_v27 }
 0x47e   :  { %2435 = vmatprep.subr.bf16.mxu1 %v3297_v30 }
 0x481   :  { %2437 = vmatpush3.bf16.msra.mxu1 %v3297_v30 }
 0x482   :  { %2439 = vmatprep.subr.bf16.mxu1 %v3301_v33 }
 0x485   :  { %2441 = vmatpush3.bf16.msra.mxu1 %v3301_v33 }
 0x486   :  { %2443 = vmatprep.subr.bf16.mxu1 %v3305_v36 }
 0x489   :  { %2445 = vmatpush3.bf16.msra.mxu1 %v3305_v36 }
 0x48a   :  { %2447 = vmatprep.subr.bf16.mxu1 %v3309_v39 }
 0x48d   :  { %2449 = vmatpush3.bf16.msra.mxu1 %v3309_v39 }
 0x48e   :  { %2451 = vmatprep.subr.bf16.mxu1 %v3313_v42 }
 0x491   :  { %2453 = vmatpush3.bf16.msra.mxu1 %v3313_v42 }
 0x492   :  { %2455 = vmatprep.subr.bf16.mxu1 %v3317_v45 }
 0x495   :  { %2457 = vmatpush3.bf16.msra.mxu1 %v3317_v45 }
 0x496   :  { %2459 = vmatprep.subr.bf16.mxu1 %v3321_v48 }
 0x499   :  { %2461 = vmatpush3.bf16.msra.mxu1 %v3321_v48 }
 0x52f   :  { %v1970_v2 = vpop.f32.mrb[4].mxu1 }
 0x530   :  { %v810_v59 = vpop.f32.mrb[5].mxu1 }
 0x531   :  { %2038 = vmatprep.mubr.f32.mxu1 %v810_v59  ;;  %v1458_v59 = vld [vmem:[#allocation19 + $0x18] sm:$0xff] }
 0x532   :  { %2039 = vmatmul.mubr.f32.vlgmr.msra.gmra.mrb[6].mxu1 %v1970_v2  ;;  %v2603_v2 = vpack.c.bf16 %v1456_v57, %v1455_v56 }
 0x605   :  { %v2040_v60 = vpop.f32.mrb[6].mxu1 }
 0x606   :  { %v970_v61 = vadd.f32 %v2040_v60, %v3328_v51  ;;  %v960_v62 = vpop.f32.mrb[7].mxu1  ;;  %v2606_v60 = vpack.c.bf16 %v1458_v59, %v1457_v58 }
 0x607   :  { %v969_v63 = vadd.f32 %v3328_v51, %v960_v62  ;;  %v1460_v62 = vld [vmem:[#allocation19 + $0x28] sm:$0xff] }
 0x608   :  { %2660 = vtanh.f32 %v970_v61  ;;  %v1459_v61 = vld [vmem:[#allocation19 + $0x20] sm:$0xff] }
 0x609   :  { %2662 = vtanh.f32 %v969_v63  ;;  %v2609_v63 = vpack.c.bf16 %v1460_v62, %v1459_v61 }
 0x612   :  { %v2661_v0 = vpop.eup %2660 }
 0x613   :  { %v2663_v3 = vpop.eup %2662 }
 0x614   :  { %v2462_v4 = vpack.c.bf16 %v2661_v0, %v2663_v3 }
 0x616   :  { %2463 = vmatprep.subr.bf16.mxu0 %v2462_v4 }
 0x617   :  { %2465 = vmatpush3.bf16.msra.mxu0 %v2462_v4 }
 0x618   :  { %2467 = vmatprep.subr.bf16.mxu0 %v3260_v1 }
 0x61a   :  { %2046 = vmatmul.mubr.msk.f32.vlgmr.msra.gmra.mrb[4].mxu0 %vm201_vm0, %v3254_v9  ;;  %v1214_v9 = vld [vmem:[#allocation16] sm:$0xff] }
 0x61b   :  { %2469 = vmatpush3.bf16.msra.mxu0 %v3260_v1  ;;  %2080 = vmatprep.mubr.f32.mxu0 %v2663_v3  ;;  %v1215_v1 = vld [vmem:[#allocation16 + $0x8] sm:$0xff]  ;;  %v1462_v3 = vld [vmem:[#allocation19 + $0x38] sm:$0xff] }
 0x61c   :  { %2471 = vmatprep.subr.bf16.mxu0 %v3263_v5  ;;  %v3403_v6 = vpack.c.bf16 %v1215_v1, %v1214_v9  ;;  %v1463_v9 = vld [vmem:[#allocation19 + $0x40] sm:$0xff]  ;;  %v1464_v1 = vld [vmem:[#allocation19 + $0x48] sm:$0xff] }
 0x61f   :  { %2473 = vmatpush3.bf16.msra.mxu0 %v3263_v5  ;;  %v2990_v5 = vmov 0.0|0.0  }
 0x620   :  { %2475 = vmatprep.subr.bf16.mxu0 %v3269_v8  ;;  %2530 = vmatprep.subr.bf16.mxu1 %v2990_v5 }
 0x621   :  { %2532 = vmatpush3.bf16.msra.mxu1 %v3403_v6 }
 0x622   :  { %2533 = vmatprep.subr.bf16.mxu1 %v2990_v5 }
 0x623   :  { %2477 = vmatpush3.bf16.msra.mxu0 %v3269_v8 }
 0x624   :  { %2479 = vmatprep.subr.bf16.mxu0 %v3273_v12 }
 0x627   :  { %2481 = vmatpush3.bf16.msra.mxu0 %v3273_v12  ;;  %v3410_v12 = vpack.c.bf16 %v1217_v11, %v1216_v10 }
 0x628   :  { %2483 = vmatprep.subr.bf16.mxu0 %v3277_v15 }
 0x629   :  { %2535 = vmatpush3.bf16.msra.mxu1 %v3410_v12 }
 0x62a   :  { %2536 = vmatprep.subr.bf16.mxu1 %v2990_v5 }
 0x62b   :  { %2485 = vmatpush3.bf16.msra.mxu0 %v3277_v15  ;;  %v3416_v15 = vpack.c.bf16 %v1219_v14, %v1218_v13  ;;  %v1466_v13 = vld [vmem:[#allocation19 + $0x58] sm:$0xff] }
 0x62c   :  { %2487 = vmatprep.subr.bf16.mxu0 %v3281_v18 }
 0x62d   :  { %2538 = vmatpush3.bf16.msra.mxu1 %v3416_v15 }
 0x62e   :  { %2539 = vmatprep.subr.bf16.mxu1 %v2990_v5 }
 0x62f   :  { %2489 = vmatpush3.bf16.msra.mxu0 %v3281_v18  ;;  %v3422_v18 = vpack.c.bf16 %v1221_v17, %v1220_v16  ;;  %v1468_v16 = vld [vmem:[#allocation19 + $0x68] sm:$0xff] }
 0x630   :  { %2491 = vmatprep.subr.bf16.mxu0 %v3285_v21 }
 0x631   :  { %2541 = vmatpush3.bf16.msra.mxu1 %v3422_v18 }
 0x632   :  { %2542 = vmatprep.subr.bf16.mxu1 %v2990_v5 }
 0x633   :  { %2493 = vmatpush3.bf16.msra.mxu0 %v3285_v21  ;;  %v2543_v21 = vpack.c.bf16 %v1223_v20, %v1222_v19  ;;  %v1470_v19 = vld [vmem:[#allocation19 + $0x78] sm:$0xff] }
 0x634   :  { %2495 = vmatprep.subr.bf16.mxu0 %v3289_v24 }
 0x635   :  { %2544 = vmatpush3.bf16.msra.mxu1 %v2543_v21 }
 0x636   :  { %2545 = vmatprep.subr.bf16.mxu1 %v2990_v5 }
 0x637   :  { %2497 = vmatpush3.bf16.msra.mxu0 %v3289_v24  ;;  %v2546_v24 = vpack.c.bf16 %v1225_v23, %v1224_v22 }
 0x638   :  { %2499 = vmatprep.subr.bf16.mxu0 %v3293_v27 }
 0x639   :  { %2547 = vmatpush3.bf16.msra.mxu1 %v2546_v24 }
 0x63a   :  { %2081 = vmatmul.mubr.f32.vlgmr.msra.gmra.mrb[6].mxu0 %v2661_v0  ;;  %2548 = vmatprep.subr.bf16.mxu1 %v2990_v5  ;;  %v1461_v0 = vld [vmem:[#allocation19 + $0x30] sm:$0xff] }
 0x63b   :  { %2501 = vmatpush3.bf16.msra.mxu0 %v3293_v27  ;;  %v2992_v27 = vmov 0.0   ;;  %v2612_v4 = vpack.c.bf16 %v1462_v3, %v1461_v0 }
 0x63c   :  { %2503 = vmatprep.subr.bf16.mxu0 %v3297_v30  ;;  %2150 = vmatprep.mubr.msk.f32.mxu1 %vm2991_vm1, %v2992_v27 }
 0x63d   :  { %2550 = vmatpush3.bf16.msra.mxu1 %v2549_v28 }
 0x63e   :  { %2551 = vmatprep.subr.bf16.mxu1 %v2990_v5 }
 0x63f   :  { %2505 = vmatpush3.bf16.msra.mxu0 %v3297_v30  ;;  %v1229_v30 = vld [vmem:[#allocation16 + $0x78] sm:$0xff] }
 0x640   :  { %2507 = vmatprep.subr.bf16.mxu0 %v3301_v33  ;;  %v2552_v31 = vpack.c.bf16 %v1229_v30, %v1228_v29 }
 0x642   :  { %2553 = vmatpush3.bf16.msra.mxu1 %v2552_v31 }
 0x643   :  { %2509 = vmatpush3.bf16.msra.mxu0 %v3301_v33  ;;  %2578 = vmatprep.subr.bf16.mxu1 %v2990_v5 }
 0x644   :  { %2511 = vmatprep.subr.bf16.mxu0 %v3305_v36 }
 0x647   :  { %2513 = vmatpush3.bf16.msra.mxu0 %v3305_v36 }
 0x648   :  { %2515 = vmatprep.subr.bf16.mxu0 %v3309_v39 }
 0x64b   :  { %2517 = vmatpush3.bf16.msra.mxu0 %v3309_v39 }
 0x64c   :  { %2519 = vmatprep.subr.bf16.mxu0 %v3313_v42 }
 0x64f   :  { %2521 = vmatpush3.bf16.msra.mxu0 %v3313_v42 }
 0x650   :  { %2523 = vmatprep.subr.bf16.mxu0 %v3317_v45 }
 0x653   :  { %2525 = vmatpush3.bf16.msra.mxu0 %v3317_v45 }
 0x654   :  { %2527 = vmatprep.subr.bf16.mxu0 %v3321_v48 }
 0x657   :  { %2529 = vmatpush3.bf16.msra.mxu0 %v3321_v48 }
 0x658   :  { %2554 = vmatprep.subr.bf16.mxu0 %v2990_v5 }
 0x6ed   :  { %v2047_v7 = vpop.f32.mrb[4].mxu0 }
 0x6ee   :  { %v1039_v8 = vpop.f32.mrb[5].mxu0 }
 0x6ef   :  { %2115 = vmatprep.mubr.f32.mxu0 %v1039_v8 }
 0x6f0   :  { %2116 = vmatmul.mubr.f32.vlgmr.msra.gmra.mrb[6].mxu0 %v2047_v7 }
 0x6f1   :  { %2556 = vmatpush3.bf16.msra.mxu0 %v3403_v6  ;;  %2185 = vmatprep.mubr.msk.f32.mxu0 %vm2991_vm1, %v2992_v27 }
 0x6f2   :  { %2557 = vmatprep.subr.bf16.mxu0 %v2990_v5 }
 0x6f5   :  { %2559 = vmatpush3.bf16.msra.mxu0 %v3410_v12 }
 0x6f6   :  { %2560 = vmatprep.subr.bf16.mxu0 %v2990_v5 }
 0x6f9   :  { %2562 = vmatpush3.bf16.msra.mxu0 %v3416_v15 }
 0x6fa   :  { %2563 = vmatprep.subr.bf16.mxu0 %v2990_v5 }
 0x6fd   :  { %2565 = vmatpush3.bf16.msra.mxu0 %v3422_v18 }
 0x6fe   :  { %2566 = vmatprep.subr.bf16.mxu0 %v2990_v5 }
 0x701   :  { %2568 = vmatpush3.bf16.msra.mxu0 %v2543_v21 }
 0x702   :  { %2569 = vmatprep.subr.bf16.mxu0 %v2990_v5 }
 0x705   :  { %2571 = vmatpush3.bf16.msra.mxu0 %v2546_v24 }
 0x706   :  { %2572 = vmatprep.subr.bf16.mxu0 %v2990_v5 }
 0x709   :  { %2574 = vmatpush3.bf16.msra.mxu0 %v2549_v28 }
 0x70a   :  { %2575 = vmatprep.subr.bf16.mxu0 %v2990_v5 }
 0x70d   :  { %2577 = vmatpush3.bf16.msra.mxu0 %v2552_v31 }
 0x70e   :  { %2602 = vmatprep.subr.bf16.mxu0 %v2990_v5 }
 0x7c3   :  { %v2117_v32 = vpop.f32.mrb[6].mxu0 }
 0x7c4   :  { %v1199_v33 = vadd.f32 %v2117_v32, %v3328_v51  ;;  %v1189_v34 = vpop.f32.mrb[7].mxu0 }
 0x7c5   :  { %v1198_v35 = vadd.f32 %v3328_v51, %v1189_v34  ;;  %v1580_v51 = vld [vmem:[#allocation17] ss:$0 sm:$0xff] }
 0x7c6   :  { %2664 = vtanh.f32 %v1199_v33 }
 0x7c7   :  { %2666 = vtanh.f32 %v1198_v35 }
 0x7d0   :  { %v2665_v36 = vpop.eup %2664 }
 0x7d1   :  { %v2667_v37 = vpop.eup %2666  ;;  %v1208_v38 = vrot.slane %v2665_v36, 4 }
 0x7d2   :  { %v1202_v39 = vrot.slane %v2667_v37, 4 }
 0x7d3   :  { %v1209_v40 = vmax.f32 %v2665_v36, %v1208_v38 }
 0x7d4   :  { %v1203_v41 = vmax.f32 %v2667_v37, %v1202_v39 }
 0x7d5   :  { %v1210_v42 = vrot.slane %v1209_v40, 2 }
 0x7d6   :  { %v1204_v43 = vrot.slane %v1203_v41, 2 }
 0x7d7   :  { %v1211_v44 = vmax.f32 %v1209_v40, %v1210_v42 }
 0x7d8   :  { %v1205_v45 = vmax.f32 %v1203_v41, %v1204_v43 }
 0x7d9   :  { %v1212_v46 = vrot.slane %v1211_v44, 1 }
 0x7da   :  { %v1206_v47 = vrot.slane %v1205_v45, 1 }
 0x7db   :  { %v1213_v48 = vmax.f32 %v1211_v44, %v1212_v46 }
 0x7dc   :  { %v1207_v49 = vmax.f32 %v1205_v45, %v1206_v47 }
 0x7de   :  { %v1240_v50 = vsel %vm1239_vm2, %v1213_v48, %v1207_v49 }
 0x7df   :  { %2151 = vmatmul.mubr.f32.vlgmr.msra.gmra.mrb[8].mxu1 %v1240_v50 }
 0x7e0   :  { %2580 = vmatpush3.bf16.msra.mxu1 %v3403_v6  ;;  %2220 = vmatprep.mubr.msk.f32.mxu1 %vm2991_vm1, %v2992_v27  ;;  %v2615_v6 = vpack.c.bf16 %v1464_v1, %v1463_v9 }
 0x7e1   :  { %2581 = vmatprep.subr.bf16.mxu1 %v2990_v5 }
 0x7e4   :  { %2583 = vmatpush3.bf16.msra.mxu1 %v3410_v12  ;;  %v1465_v12 = vld [vmem:[#allocation19 + $0x50] sm:$0xff] }
 0x7e5   :  { %2584 = vmatprep.subr.bf16.mxu1 %v2990_v5  ;;  %v2618_v14 = vpack.c.bf16 %v1466_v13, %v1465_v12 }
 0x7e8   :  { %2586 = vmatpush3.bf16.msra.mxu1 %v3416_v15  ;;  %v1467_v15 = vld [vmem:[#allocation19 + $0x60] sm:$0xff] }
 0x7e9   :  { %2587 = vmatprep.subr.bf16.mxu1 %v2990_v5  ;;  %v2621_v17 = vpack.c.bf16 %v1468_v16, %v1467_v15 }
 0x7ec   :  { %2589 = vmatpush3.bf16.msra.mxu1 %v3422_v18  ;;  %v1469_v18 = vld [vmem:[#allocation19 + $0x70] sm:$0xff] }
 0x7ed   :  { %2590 = vmatprep.subr.bf16.mxu1 %v2990_v5  ;;  %v2624_v20 = vpack.c.bf16 %v1470_v19, %v1469_v18 }
 0x7f0   :  { %2592 = vmatpush3.bf16.msra.mxu1 %v2543_v21 }
 0x7f1   :  { %2593 = vmatprep.subr.bf16.mxu1 %v2990_v5 }
 0x7f4   :  { %2595 = vmatpush3.bf16.msra.mxu1 %v2546_v24 }
 0x7f5   :  { %2596 = vmatprep.subr.bf16.mxu1 %v2990_v5 }
 0x7f8   :  { %2598 = vmatpush3.bf16.msra.mxu1 %v2549_v28 }
 0x7f9   :  { %2599 = vmatprep.subr.bf16.mxu1 %v2990_v5 }
 0x7fc   :  { %2601 = vmatpush3.bf16.msra.mxu1 %v2552_v31 }
 0x8b2   :  { %v1308_v52 = vpop.f32.mrb[8].mxu1 }
 0x8b3   :  { %v1309_v53 = vadd.f32 %v1580_v51, %v1308_v52  ;;  %v2152_v54 = vpop.f32.mrb[9].mxu1 }
 0x8b5   :  { %2668 = vtanh.f32 %v1309_v53 }
 0x8bf   :  { %v2669_v55 = vpop.eup %2668 }
 0x8c0   :  { %2186 = vmatmul.mubr.f32.vlgmr.msra.gmra.mrb[8].mxu0 %v2669_v55 }
 0x8c1   :  { %2255 = vmatprep.mubr.msk.f32.mxu0 %vm2991_vm1, %v2992_v27  ;;  %2604 = vmatpush3.bf16.msra.mxu0 %v2603_v2 }
 0x8c2   :  { %2605 = vmatprep.subr.bf16.mxu0 %v2990_v5 }
 0x8c5   :  { %2607 = vmatpush3.bf16.msra.mxu0 %v2606_v60 }
 0x8c6   :  { %2608 = vmatprep.subr.bf16.mxu0 %v2990_v5 }
 0x8c9   :  { %2610 = vmatpush3.bf16.msra.mxu0 %v2609_v63 }
 0x8ca   :  { %2611 = vmatprep.subr.bf16.mxu0 %v2990_v5 }
 0x8cd   :  { %2613 = vmatpush3.bf16.msra.mxu0 %v2612_v4 }
 0x8ce   :  { %2614 = vmatprep.subr.bf16.mxu0 %v2990_v5 }
 0x8d1   :  { %2616 = vmatpush3.bf16.msra.mxu0 %v2615_v6 }
 0x8d2   :  { %2617 = vmatprep.subr.bf16.mxu0 %v2990_v5 }
 0x8d5   :  { %2619 = vmatpush3.bf16.msra.mxu0 %v2618_v14 }
 0x8d6   :  { %2620 = vmatprep.subr.bf16.mxu0 %v2990_v5 }
 0x8d9   :  { %2622 = vmatpush3.bf16.msra.mxu0 %v2621_v17 }
 0x8da   :  { %2623 = vmatprep.subr.bf16.mxu0 %v2990_v5 }
 0x8dd   :  { %2625 = vmatpush3.bf16.msra.mxu0 %v2624_v20 }
 0x993   :  { %v1379_v7 = vpop.f32.mrb[8].mxu0 }
 0x994   :  { %v1380_v8 = vadd.f32 %v1580_v51, %v1379_v7  ;;  %v2187_v10 = vpop.f32.mrb[9].mxu0 }
 0x996   :  { %2670 = vtanh.f32 %v1380_v8 }
 0x9a0   :  { %v2671_v11 = vpop.eup %2670 }
 0x9a1   :  { %2221 = vmatmul.mubr.f32.vlgmr.msra.gmra.mrb[10].mxu1 %v2671_v11 }
 0xa74   :  { %v1450_v21 = vpop.f32.mrb[10].mxu1 }
 0xa75   :  { %v1451_v22 = vadd.f32 %v1580_v51, %v1450_v21  ;;  %v2222_v23 = vpop.f32.mrb[11].mxu1 }
 0xa77   :  { %2672 = vtanh.f32 %v1451_v22 }
 0xa81   :  { %v2673_v24 = vpop.eup %2672 }
 0xa82   :  { %2256 = vmatmul.mubr.f32.vlgmr.msra.gmra.mrb[10].mxu0 %v2673_v24 }
 0xb55   :  { %v1544_v26 = vpop.f32.mrb[10].mxu0 }
 0xb56   :  { %v1545_v27 = vadd.f32 %v1581_v25, %v1544_v26  ;;  %v2257_v28 = vpop.f32.mrb[11].mxu0 }
 0xb58   :  { %1548 = vst [vmem:[#allocation22] sm:$0x3] %v1545_v27 }
 0xb59   :  { %2949 = shalt.err (!%p2946_p2)
}
 0xb5a   :  { %s2950_s26 = scalar_lea.hbm %s3488_s12, 32 }
 0xb5b   :  { %p2951_p3 = scmp.ne.s32.totalorder %s3488_s12, %s2950_s26  ;;  %p2954_p4 = scmp.lt.u32.totalorder %s2950_s26, %s3488_s12 }
 0xb5d   :  { %p2956_p5 = pnand %p2954_p4, %p2951_p3 }
 0xb5f   :  { %2959 = shalt.err (!%p2956_p5)
}
 0xb60   :  { %1558 = dma.vmem_to_hbm [thread:$0]  %s1556_s16, 32, %s3488_s12, [#allocation4]  }
 0xb61   :  { %2974 = dma.done.wait [#allocation4], 32  }
 0xb62   :  { %2975 = vsyncadd [#allocation4], 4294967264 }
 0xb63   :  { %1562 = vsyncpa [#allocation3], 1 }
 0xb64   :  { %1563 = vsyncpa [#allocation6], 1 }
 0xb65   :  { %1564 = vsyncpa [#allocation9], 1 }
 0xb66   :  { %1565 = vsyncpa [#allocation12], 1 }
 0xb67   :  { %1566 = vsyncpa [#allocation15], 1 }
 0xb68   :  { %1567 = vsyncpa [#allocation18], 1 }
 0xb69   :  { %1568 = vsyncpa [#allocation21], 1 }
 0xb6a   :  { %1569 = vsyncpa [#allocation4], 1 }

</bundles_post_ra>
